<compile_context>
chip_gen: v5e
topology: v5e:2x2
jax: 0.10.0
libtpu: 0.0.40
codegen_flags: <defaults>
</compile_context>

<pallas_src>
import math

import jax
import jax.numpy as jnp
from jax.experimental import pallas as pl
from jax.experimental.pallas import tpu as pltpu


# ----------------------------------------------------------------------------
# Fused CAAMSFT Pallas kernel
# ----------------------------------------------------------------------------
def _caamsft_kernel(a_ref, c_ref, w0_ref, b0_ref, w1_ref, b1_ref, o_ref):
    # a_ref / c_ref / o_ref : (C, TN)   -- channels on sublanes, spatial on lanes
    # w0_ref : (2C, C)   concat([wsc0, wsh0], axis=0)
    # w1_ref : (2C, 2C)  block-diag(wsc1, wsh1)
    # b0_ref / b1_ref : (2C, 1)  (b1 scale-half already has the +1 folded in)
    cond = c_ref[...]

    # layer 0: both branches in one 128-wide matmul, f32 accumulate
    h = jnp.dot(w0_ref[...], cond, preferred_element_type=jnp.float32)
    h = h + b0_ref[...]
    h = jnp.where(h >= 0.0, h, 0.1 * h)            # LeakyReLU(0.1) on the VPU

    # layer 1: block-diagonal 128x128 matmul keeps the two branches separate
    y = jnp.dot(w1_ref[...], h, preferred_element_type=jnp.float32)
    y = y + b1_ref[...]

    C = a_ref.shape[0]
    scale_p1 = y[:C, :]        # == scale + 1   (+1 folded into the bias)
    shift = y[C:, :]
    o_ref[...] = (a_ref[...] * scale_p1 + shift).astype(o_ref.dtype)


def _pick_spatial_tile(hw, batch, target=2048):
    """Largest power-of-two multiple of 128 that divides hw, capped at target,
    shrunk (if possible) so the grid has >= 2 steps."""
    tn = 128
    t = 128
    while t <= min(target, hw):
        if hw % t == 0:
            tn = t
        t *= 2
    while batch * (hw // tn) < 2 and tn > 128:
        tn //= 2
    return tn


@jax.jit
def caamsft_forward(x0, x1, params):
    """CAAMSFT.forward([x0, x1]) — NCHW in, NCHW out (no transposes)."""
    B, C, H, W = x0.shape
    HW = H * W

    a = x0.reshape(B, C, HW)          # free reshape (merge of trailing dims)
    c = x1.reshape(B, C, HW)

    # Pad the spatial (lane) dim only if H*W is not already a multiple of 128.
    HWp = ((HW + 127) // 128) * 128
    if HWp != HW:
        a = jnp.pad(a, ((0, 0), (0, 0), (0, HWp - HW)))
        c = jnp.pad(c, ((0, 0), (0, 0), (0, HWp - HW)))

    TN = _pick_spatial_tile(HWp, B)

    # Fused weight prep (tiny): branch-concat layer 0, block-diag layer 1,
    # '+1' folded into the scale-branch layer-1 bias.  Conv2d 1x1 weights are
    # [out, in], which is exactly the W @ X orientation used here.
    w0 = jnp.concatenate([params["wsc0"], params["wsh0"]], axis=0)       # (2C, C)
    b0 = jnp.concatenate([params["bsc0"], params["bsh0"]])[:, None]      # (2C, 1)
    zero = jnp.zeros((C, C), params["wsc1"].dtype)
    w1 = jnp.block([[params["wsc1"], zero], [zero, params["wsh1"]]])     # (2C, 2C)
    b1 = jnp.concatenate([params["bsc1"] + 1.0, params["bsh1"]])[:, None]

    row_spec = pl.BlockSpec((None, C, TN), lambda b, j: (b, 0, j))
    const2 = lambda b, j: (0, 0)

    out = pl.pallas_call(
        _caamsft_kernel,
        out_shape=jax.ShapeDtypeStruct((B, C, HWp), jnp.float32),
        grid_spec=pltpu.PrefetchScalarGridSpec(
            num_scalar_prefetch=0,
            grid=(B, HWp // TN),
            in_specs=[
                row_spec,                                   # x0 tile  (C, TN)
                row_spec,                                   # cond tile (C, TN)
                pl.BlockSpec((2 * C, C), const2),           # fused layer-0 W
                pl.BlockSpec((2 * C, 1), const2),           # fused layer-0 b
                pl.BlockSpec((2 * C, 2 * C), const2),       # block-diag layer-1 W
                pl.BlockSpec((2 * C, 1), const2),           # fused layer-1 b (+1)
            ],
            out_specs=row_spec,
        ),
        compiler_params=pltpu.CompilerParams(
            dimension_semantics=("parallel", "parallel")),
    )(a, c, w0, b0, w1, b1)

    if HWp != HW:
        out = out[..., :HW]
    return out.reshape(B, C, H, W)


# ----------------------------------------------------------------------------
# Pure-JAX reference (f32) for correctness
# ----------------------------------------------------------------------------
def caamsft_reference(x0, x1, params):
    B, C, H, W = x0.shape
    c = x1.reshape(B, C, H * W)

    def conv1x1(w, b, x):  # w: [out, in], x: [B, in, M]
        return jnp.einsum("oc,bcm->bom", w, x) + b[None, :, None]

    def branch(w0, b0, w1, b1):
        h = conv1x1(w0, b0, c)
        h = jnp.where(h >= 0.0, h, 0.1 * h)
        return conv1x1(w1, b1, h)

    scale = branch(params["wsc0"], params["bsc0"], params["wsc1"], params["bsc1"])
    shift = branch(params["wsh0"], params["bsh0"], params["wsh1"], params["bsh1"])
    out = x0.reshape(B, C, H * W) * (scale + 1.0) + shift
    return out.reshape(B, C, H, W)


# ----------------------------------------------------------------------------
# Deterministic parameter init (Conv2d 1x1 layout: weight [out, in], bias [out])
# ----------------------------------------------------------------------------
def init_params(key, n_feat):
    ks = jax.random.split(key, 8)
    std = 0.5 / math.sqrt(n_feat)

    def w(k):
        return jax.random.normal(k, (n_feat, n_feat), jnp.float32) * std

    def b(k):
        return jax.random.normal(k, (n_feat,), jnp.float32) * 0.01

    return {
        "wsc0": w(ks[0]), "bsc0": b(ks[1]),
        "wsc1": w(ks[2]), "bsc1": b(ks[3]),
        "wsh0": w(ks[4]), "bsh0": b(ks[5]),
        "wsh1": w(ks[6]), "bsh1": b(ks[7]),
    }


# ----------------------------------------------------------------------------
if __name__ == "__main__":
    n_feat = 64          # D2SR uses nf=64 for CAAMSFT
    B, H, W = 2, 16, 16

    key = jax.random.PRNGKey(0)
    pkey, akey, ckey = jax.random.split(key, 3)
    params = init_params(pkey, n_feat)

    x0 = jax.random.normal(akey, (B, n_feat, H, W), jnp.float32)  # x[0] (NCHW)
    x1 = jax.random.normal(ckey, (B, n_feat, H, W), jnp.float32)  # x[1] (NCHW)

    out = caamsft_forward(x0, x1, params)
    out = jax.block_until_ready(out)

    assert out.shape == (B, n_feat, H, W), out.shape
    assert out.dtype == jnp.float32

    ref = caamsft_reference(x0, x1, params)
    max_err = float(jnp.max(jnp.abs(out - ref)))
    assert max_err < 5e-2, f"max abs error vs reference: {max_err}"

    print("KERNEL_OK")
</pallas_src>

<mosaic_0001>
module attributes {stable_mosaic.version = 11 : i64} {
  func.func @_caamsft_kernel(%arg0: i32, %arg1: i32, %arg2: memref<1x64x256xf32, #tpu.memory_space<vmem>>, %arg3: memref<1x64x256xf32, #tpu.memory_space<vmem>>, %arg4: memref<128x64xf32, #tpu.memory_space<vmem>>, %arg5: memref<128x1xf32, #tpu.memory_space<vmem>>, %arg6: memref<128x128xf32, #tpu.memory_space<vmem>>, %arg7: memref<128x1xf32, #tpu.memory_space<vmem>>, %arg8: memref<1x64x256xf32, #tpu.memory_space<vmem>>) attributes {dimension_semantics = [#tpu.dimension_semantics<parallel>, #tpu.dimension_semantics<parallel>], iteration_bounds = array<i64: 2, 1>, scalar_prefetch = 0 : i64, scratch_operands = 0 : i64, tpu.core_type = #tpu.core_type<tc>, window_params = [{transform_indices = @transform_0, window_bounds = array<i64: 1, 64, 256>}, {transform_indices = @transform_1, window_bounds = array<i64: 1, 64, 256>}, {pipeline_mode = #tpu.pipeline_mode<synchronous>, transform_indices = @transform_2, window_bounds = array<i64: 128, 64>}, {pipeline_mode = #tpu.pipeline_mode<synchronous>, transform_indices = @transform_3, window_bounds = array<i64: 128, 1>}, {pipeline_mode = #tpu.pipeline_mode<synchronous>, transform_indices = @transform_4, window_bounds = array<i64: 128, 128>}, {pipeline_mode = #tpu.pipeline_mode<synchronous>, transform_indices = @transform_5, window_bounds = array<i64: 128, 1>}, {transform_indices = @transform_6, window_bounds = array<i64: 1, 64, 256>}]} {
    %c0 = arith.constant 0 : index
    %c0_0 = arith.constant 0 : index
    %c0_1 = arith.constant 0 : index
    %0 = vector.load %arg3[%c0, %c0_0, %c0_1] : memref<1x64x256xf32, #tpu.memory_space<vmem>>, vector<1x64x256xf32>
    %1 = vector.shape_cast %0 : vector<1x64x256xf32> to vector<64x256xf32>
    %c0_2 = arith.constant 0 : index
    %c0_3 = arith.constant 0 : index
    %2 = vector.load %arg4[%c0_2, %c0_3] : memref<128x64xf32, #tpu.memory_space<vmem>>, vector<128x64xf32>
    %cst = arith.constant dense<0.000000e+00> : vector<128x256xf32>
    %3 = tpu.matmul %2, %1, %cst {dimension_numbers = #tpu.dot_dimension_numbers<[1], [0], [0], [1], [0, 0, 1, 1], [], []>} : vector<128x64xf32>, vector<64x256xf32>, vector<128x256xf32> -> vector<128x256xf32>
    %c0_4 = arith.constant 0 : index
    %c0_5 = arith.constant 0 : index
    %4 = vector.load %arg5[%c0_4, %c0_5] : memref<128x1xf32, #tpu.memory_space<vmem>>, vector<128x1xf32>
    %5 = vector.broadcast %4 : vector<128x1xf32> to vector<128x256xf32>
    %6 = arith.addf %3, %5 : vector<128x256xf32>
    %cst_6 = arith.constant 0.000000e+00 : f32
    %7 = vector.broadcast %cst_6 : f32 to vector<128x256xf32>
    %8 = arith.cmpf oge, %6, %7 : vector<128x256xf32>
    %cst_7 = arith.constant 1.000000e-01 : f32
    %9 = vector.broadcast %cst_7 : f32 to vector<128x256xf32>
    %10 = arith.mulf %9, %6 : vector<128x256xf32>
    %11 = arith.select %8, %6, %10 : vector<128x256xi1>, vector<128x256xf32>
    %c0_8 = arith.constant 0 : index
    %c0_9 = arith.constant 0 : index
    %12 = vector.load %arg6[%c0_8, %c0_9] : memref<128x128xf32, #tpu.memory_space<vmem>>, vector<128x128xf32>
    %cst_10 = arith.constant dense<0.000000e+00> : vector<128x256xf32>
    %13 = tpu.matmul %12, %11, %cst_10 {dimension_numbers = #tpu.dot_dimension_numbers<[1], [0], [0], [1], [0, 0, 1, 1], [], []>} : vector<128x128xf32>, vector<128x256xf32>, vector<128x256xf32> -> vector<128x256xf32>
    %c0_11 = arith.constant 0 : index
    %c0_12 = arith.constant 0 : index
    %14 = vector.load %arg7[%c0_11, %c0_12] : memref<128x1xf32, #tpu.memory_space<vmem>>, vector<128x1xf32>
    %15 = vector.broadcast %14 : vector<128x1xf32> to vector<128x256xf32>
    %16 = arith.addf %13, %15 : vector<128x256xf32>
    %17 = vector.extract_strided_slice %16 {offsets = [0, 0], sizes = [64, 256], strides = [1, 1]} : vector<128x256xf32> to vector<64x256xf32>
    %18 = vector.extract_strided_slice %16 {offsets = [64, 0], sizes = [64, 256], strides = [1, 1]} : vector<128x256xf32> to vector<64x256xf32>
    %c0_13 = arith.constant 0 : index
    %c0_14 = arith.constant 0 : index
    %c0_15 = arith.constant 0 : index
    %19 = vector.load %arg2[%c0_13, %c0_14, %c0_15] : memref<1x64x256xf32, #tpu.memory_space<vmem>>, vector<1x64x256xf32>
    %20 = vector.shape_cast %19 : vector<1x64x256xf32> to vector<64x256xf32>
    %21 = arith.mulf %20, %17 : vector<64x256xf32>
    %22 = arith.addf %21, %18 : vector<64x256xf32>
    %c0_16 = arith.constant 0 : index
    %c0_17 = arith.constant 0 : index
    %c0_18 = arith.constant 0 : index
    %23 = vector.load %arg8[%c0_16, %c0_17, %c0_18] : memref<1x64x256xf32, #tpu.memory_space<vmem>>, vector<1x64x256xf32>
    %24 = vector.shape_cast %23 : vector<1x64x256xf32> to vector<64x256xf32>
    %25 = vector.shape_cast %22 : vector<64x256xf32> to vector<1x64x256xf32>
    tpu.vector_store %arg8[%c0_16, %c0_17, %c0_18], %25 {strides = array<i32>} : memref<1x64x256xf32, #tpu.memory_space<vmem>>, vector<1x64x256xf32>,
    return
  }
  func.func @transform_0(%arg0: i32, %arg1: i32) -> (i32, i32, i32) {
    %c0_i32 = arith.constant 0 : i32
    %c0_i32_0 = arith.constant 0 : i32
    return %arg0, %c0_i32, %arg1 : i32, i32, i32
  }
  func.func @transform_1(%arg0: i32, %arg1: i32) -> (i32, i32, i32) {
    %c0_i32 = arith.constant 0 : i32
    %c0_i32_0 = arith.constant 0 : i32
    return %arg0, %c0_i32, %arg1 : i32, i32, i32
  }
  func.func @transform_2(%arg0: i32, %arg1: i32) -> (i32, i32) {
    %c0_i32 = arith.constant 0 : i32
    %c0_i32_0 = arith.constant 0 : i32
    %c0_i32_1 = arith.constant 0 : i32
    return %c0_i32, %c0_i32_0 : i32, i32
  }
  func.func @transform_3(%arg0: i32, %arg1: i32) -> (i32, i32) {
    %c0_i32 = arith.constant 0 : i32
    %c0_i32_0 = arith.constant 0 : i32
    %c0_i32_1 = arith.constant 0 : i32
    return %c0_i32, %c0_i32_0 : i32, i32
  }
  func.func @transform_4(%arg0: i32, %arg1: i32) -> (i32, i32) {
    %c0_i32 = arith.constant 0 : i32
    %c0_i32_0 = arith.constant 0 : i32
    %c0_i32_1 = arith.constant 0 : i32
    return %c0_i32, %c0_i32_0 : i32, i32
  }
  func.func @transform_5(%arg0: i32, %arg1: i32) -> (i32, i32) {
    %c0_i32 = arith.constant 0 : i32
    %c0_i32_0 = arith.constant 0 : i32
    %c0_i32_1 = arith.constant 0 : i32
    return %c0_i32, %c0_i32_0 : i32, i32
  }
  func.func @transform_6(%arg0: i32, %arg1: i32) -> (i32, i32, i32) {
    %c0_i32 = arith.constant 0 : i32
    %c0_i32_0 = arith.constant 0 : i32
    return %arg0, %c0_i32, %arg1 : i32, i32, i32
  }
}

</mosaic_0001>

<bundles_post_ra>
// kernel: caamsft_forward.1
= control target key start
LH: loop header
LB: loop body
LE: loop exit
PB: predicated region body
PF: predicated region fallthrough
CT: control target
= control target key end

     0   :  { %s1309_s21 = smov 0   ;;  %s1311_s22 = smov 0   ;;  %s1761_s0 = inlined_call_operand.vmem [shape: f32[2,64,256], index: 0, kind: input, shape index: {}]   ;;  %s1762_s1 = inlined_call_operand.vmem [shape: f32[2,64,256], index: 1, kind: input, shape index: {}]   ;;  %s1763_s2 = inlined_call_operand.vmem [shape: f32[128,64], index: 2, kind: input, shape index: {}]   ;;  %s1764_s3 = inlined_call_operand.vmem [shape: f32[128,1], index: 3, kind: input, shape index: {}]   ;;  %s1765_s4 = inlined_call_operand.vmem [shape: f32[128,128], index: 4, kind: input, shape index: {}]   ;;  %s1766_s5 = inlined_call_operand.vmem [shape: f32[128,1], index: 5, kind: input, shape index: {}]   ;;  %s1767_s6 = inlined_call_operand.vmem [shape: f32[2,64,256], index: 6, kind: output, shape index: {}]  }
   0x1   :  { %s1313_s23 = smov 0  }
   0x2 LB: > { %s28_s24 = sadd.s32 1, %s1267_s22  ;;  %p1145_p0 = scmp.ge.s32.totalorder %s1271_s23, 1  ;;  %s1271_s23 = sphi %s1313_s23, %s16_s23   ;;  %s1267_s22 = sphi %s1311_s22, %s1769_s22   ;;  %s1263_s21 = sphi %s1309_s21, %s1768_s21  }
   0x3   : > { %p30_p1 = scmp.ge.s32.totalorder %s28_s24, 2  ;;  %p250_p2 = scmp.lt.s32.totalorder %s1271_s23, 3 }
   0x5   : > { %s1771_s24 = smov (%p30_p1, %s28_s24), 0  ;;  %p251_p3 = pnand %p1145_p0, %p250_p2 }
   0x6   : > { %p298_p4 = scmp.lt.s32.totalorder (!%p251_p3), %s1263_s21, 1 }
   0x7   : > { %254 = sbr.rel (%p251_p3) target bundleno = 565 (0x235), region = 44 }
   0xc   : > { %v374_v0 = vld [vmem:[%s1764_s3 + $0x78] sm:$0xff]  ;;  %v372_v1 = vld [vmem:[%s1764_s3 + $0x68] sm:$0xff]  ;;  %v1273_v2 = vmov 0   ;;  %s1773_s21 = smov (!%p298_p4, %s1263_s21), 1  ;;  %v373_v8 = vld [vmem:[%s1764_s3 + $0x70] sm:$0xff]  ;;  %vm455_vm0 = vcmask 523264  }
   0xd   : > { %1246 = vset.pattern.permute.xlu0 %v1273_v2  ;;  %1247 = vset.pattern.permute.xlu1 %v1273_v2  ;;  %v370_v3 = vld [vmem:[%s1764_s3 + $0x58] sm:$0xff]  ;;  %s1336_s7 = sshll.u32 %s1773_s21, 7  ;;  %v371_v9 = vld [vmem:[%s1764_s3 + $0x60] sm:$0xff]  ;;  %v369_v14 = vld [vmem:[%s1764_s3 + $0x50] sm:$0xff] }
   0xe   : > { %452 = vperm.xlu0 %1246, %v374_v0   ;;  %442 = vperm.xlu1 %1247, %v372_v1   ;;  %s1342_s10 = scalar_lea.vmem %s1762_s1, %s1336_s7  ;;  %v368_v19 = vld [vmem:[%s1764_s3 + $0x48] sm:$0xff]  ;;  %v367_v20 = vld [vmem:[%s1764_s3 + $0x40] sm:$0xff]  ;;  %v366_v23 = vld [vmem:[%s1764_s3 + $0x38] sm:$0xff]  ;;  %s1688_s15 = scalar_lea.vmem %s1761_s0, %s1336_s7 }
   0xf   : > { %1248 = vset.pattern.permute.xlu2 %v1273_v2  ;;  %v341_v4 = vld [vmem:[%s1342_s10 + $0x70] sm:$0xff]  ;;  %v342_v5 = vld [vmem:[%s1342_s10 + $0x78] sm:$0xff]  ;;  %v339_v6 = vld [vmem:[%s1342_s10 + $0x60] sm:$0xff]  ;;  %s1700_s18 = scalar_lea.vmem %s1767_s6, %s1336_s7 }
  0x10   : > { %432 = vperm.xlu2 %1248, %v370_v3   ;;  %512 = vmatpush.msra.mxu0 %v341_v4  ;;  %v340_v7 = vld [vmem:[%s1342_s10 + $0x68] sm:$0xff]  ;;  %v337_v10 = vld [vmem:[%s1342_s10 + $0x50] sm:$0xff]  ;;  %v338_v11 = vld [vmem:[%s1342_s10 + $0x58] sm:$0xff] }
  0x11   : > { %577 = vmatpush.msra.mxu1 %v342_v5  ;;  %v335_v12 = vld [vmem:[%s1342_s10 + $0x40] sm:$0xff]  ;;  %v336_v13 = vld [vmem:[%s1342_s10 + $0x48] sm:$0xff]  ;;  %v333_v15 = vld [vmem:[%s1342_s10 + $0x30] sm:$0xff] }
  0x12   : > { %513 = vmatpush.msra.mxu0 %v339_v6  ;;  %v334_v16 = vld [vmem:[%s1342_s10 + $0x38] sm:$0xff]  ;;  %v331_v17 = vld [vmem:[%s1342_s10 + $0x20] sm:$0xff]  ;;  %v332_v18 = vld [vmem:[%s1342_s10 + $0x28] sm:$0xff] }
  0x13   : > { %578 = vmatpush.msra.mxu1 %v340_v7  ;;  %v329_v21 = vld [vmem:[%s1342_s10 + $0x10] sm:$0xff]  ;;  %v330_v22 = vld [vmem:[%s1342_s10 + $0x18] sm:$0xff]  ;;  %v327_v24 = vld [vmem:[%s1342_s10] sm:$0xff] }
  0x14   : > { %514 = vmatpush.msra.mxu0 %v337_v10  ;;  %v328_v25 = vld [vmem:[%s1342_s10 + $0x8] sm:$0xff]  ;;  %v343_v26 = vld [vmem:[%s1763_s2] sm:$0xff]  ;;  %v365_v27 = vld [vmem:[%s1764_s3 + $0x30] sm:$0xff] }
  0x15   : > { %579 = vmatpush.msra.mxu1 %v338_v11  ;;  %v364_v28 = vld [vmem:[%s1764_s3 + $0x28] sm:$0xff]  ;;  %v363_v29 = vld [vmem:[%s1764_s3 + $0x20] sm:$0xff]  ;;  %v362_v31 = vld [vmem:[%s1764_s3 + $0x18] sm:$0xff] }
  0x16   : > { %447 = vperm.xlu0 %1246, %v373_v8   ;;  %437 = vperm.xlu1 %1247, %v371_v9   ;;  %v344_v30 = vld [vmem:[%s1763_s2 + $0x8] sm:$0xff]  ;;  %v361_v32 = vld [vmem:[%s1764_s3 + $0x10] sm:$0xff]  ;;  %v359_v35 = vld [vmem:[%s1764_s3] sm:$0xff] }
  0x17   : > { %515 = vmatpush.msra.mxu0 %v335_v12  ;;  %580 = vmatpush.msra.mxu1 %v336_v13  ;;  %v360_v33 = vld [vmem:[%s1764_s3 + $0x8] sm:$0xff]  ;;  %v345_v34 = vld [vmem:[%s1763_s2 + $0x10] sm:$0xff]  ;;  %v346_v36 = vld [vmem:[%s1763_s2 + $0x18] sm:$0xff] }
  0x18   : > { %427 = vperm.xlu2 %1248, %v369_v14   ;;  %v347_v37 = vld [vmem:[%s1763_s2 + $0x20] sm:$0xff]  ;;  %v348_v38 = vld [vmem:[%s1763_s2 + $0x28] sm:$0xff]  ;;  %v349_v39 = vld [vmem:[%s1763_s2 + $0x30] sm:$0xff] }
  0x19   : > { %516 = vmatpush.msra.mxu0 %v333_v15  ;;  %581 = vmatpush.msra.mxu1 %v334_v16  ;;  %v746_v40 = vld [vmem:[%s1766_s5] sm:$0xff]  ;;  %v350_v41 = vld [vmem:[%s1763_s2 + $0x38] sm:$0xff]  ;;  %v748_v42 = vld [vmem:[%s1766_s5 + $0x10] sm:$0xff] }
  0x1a   : > { %v749_v43 = vld [vmem:[%s1766_s5 + $0x18] sm:$0xff]  ;;  %v351_v44 = vld [vmem:[%s1763_s2 + $0x40] sm:$0xff]  ;;  %v751_v45 = vld [vmem:[%s1766_s5 + $0x28] sm:$0xff] }
  0x1b   : > { %517 = vmatpush.msra.mxu0 %v331_v17  ;;  %582 = vmatpush.msra.mxu1 %v332_v18  ;;  %v752_v46 = vld [vmem:[%s1766_s5 + $0x30] sm:$0xff]  ;;  %v352_v47 = vld [vmem:[%s1763_s2 + $0x48] sm:$0xff]  ;;  %v754_v48 = vld [vmem:[%s1766_s5 + $0x40] sm:$0xff] }
  0x1c   : > { %v755_v49 = vld [vmem:[%s1766_s5 + $0x48] sm:$0xff]  ;;  %v353_v50 = vld [vmem:[%s1763_s2 + $0x50] sm:$0xff]  ;;  %v757_v51 = vld [vmem:[%s1766_s5 + $0x58] sm:$0xff] }
  0x1d   : > { %518 = vmatpush.msra.mxu0 %v329_v21  ;;  %583 = vmatpush.msra.mxu1 %v330_v22  ;;  %v758_v52 = vld [vmem:[%s1766_s5 + $0x60] sm:$0xff]  ;;  %v354_v53 = vld [vmem:[%s1763_s2 + $0x58] sm:$0xff]  ;;  %v747_v54 = vld [vmem:[%s1766_s5 + $0x8] sm:$0xff] }
  0x1e   : > { %422 = vperm.xlu0 %1246, %v368_v19   ;;  %417 = vperm.xlu1 %1247, %v367_v20   ;;  %v760_v55 = vld [vmem:[%s1766_s5 + $0x70] sm:$0xff]  ;;  %v761_v56 = vld [vmem:[%s1766_s5 + $0x78] sm:$0xff]  ;;  %v355_v57 = vld [vmem:[%s1763_s2 + $0x60] sm:$0xff] }
  0x1f   : > { %519 = vmatpush.msra.mxu0 %v327_v24  ;;  %584 = vmatpush.msra.mxu1 %v328_v25  ;;  %v750_v58 = vld [vmem:[%s1766_s5 + $0x20] sm:$0xff]  ;;  %v356_v59 = vld [vmem:[%s1763_s2 + $0x68] sm:$0xff]  ;;  %v753_v60 = vld [vmem:[%s1766_s5 + $0x38] sm:$0xff] }
  0x20   : > { %412 = vperm.xlu2 %1248, %v366_v23   ;;  %1152 = vmatmul.msk.f32.vlgmr.msra.gmra.mxu0 %vm455_vm0, %v343_v26  ;;  %v357_v61 = vld [vmem:[%s1763_s2 + $0x70] sm:$0xff]  ;;  %v358_v63 = vld [vmem:[%s1763_s2 + $0x78] sm:$0xff]  ;;  %v759_v0 = vld [vmem:[%s1766_s5 + $0x68] sm:$0xff] }
  0x21   : > { %1168 = vmatmul.msk.f32.vlgmr.msra.gmra.mxu1 %vm455_vm0, %v343_v26  ;;  %v756_v62 = vld [vmem:[%s1766_s5 + $0x50] sm:$0xff] }
  0x26   : > { %407 = vperm.xlu0 %1246, %v365_v27   ;;  %402 = vperm.xlu1 %1247, %v364_v28  }
  0x28   : > { %397 = vperm.xlu2 %1248, %v363_v29   ;;  %1153 = vmatmul.msk.f32.gmra.mxu0 %vm455_vm0, %v344_v30 }
  0x29   : > { %1169 = vmatmul.msk.f32.gmra.mxu1 %vm455_vm0, %v344_v30 }
  0x2e   : > { %392 = vperm.xlu0 %1246, %v362_v31   ;;  %387 = vperm.xlu1 %1247, %v361_v32  }
  0x30   : > { %382 = vperm.xlu2 %1248, %v360_v33   ;;  %1154 = vmatmul.msk.f32.gmra.mxu0 %vm455_vm0, %v345_v34 }
  0x31   : > { %1170 = vmatmul.msk.f32.gmra.mxu1 %vm455_vm0, %v345_v34 }
  0x36   : > { %377 = vperm.xlu0 %1246, %v359_v35   ;;  %764 = vperm.xlu1 %1247, %v746_v40  }
  0x38   : > { %1155 = vmatmul.msk.f32.gmra.mxu0 %vm455_vm0, %v346_v36  ;;  %769 = vperm.xlu2 %1248, %v747_v54  }
  0x39   : > { %1171 = vmatmul.msk.f32.gmra.mxu1 %vm455_vm0, %v346_v36 }
  0x3e   : > { %774 = vperm.xlu0 %1246, %v748_v42   ;;  %779 = vperm.xlu1 %1247, %v749_v43  }
  0x40   : > { %1156 = vmatmul.msk.f32.gmra.mxu0 %vm455_vm0, %v347_v37  ;;  %784 = vperm.xlu2 %1248, %v750_v58  }
  0x41   : > { %1172 = vmatmul.msk.f32.gmra.mxu1 %vm455_vm0, %v347_v37 }
  0x46   : > { %789 = vperm.xlu0 %1246, %v751_v45   ;;  %794 = vperm.xlu1 %1247, %v752_v46  }
  0x48   : > { %1157 = vmatmul.msk.f32.gmra.mxu0 %vm455_vm0, %v348_v38  ;;  %799 = vperm.xlu2 %1248, %v753_v60  }
  0x49   : > { %1173 = vmatmul.msk.f32.gmra.mxu1 %vm455_vm0, %v348_v38 }
  0x4e   : > { %804 = vperm.xlu0 %1246, %v754_v48   ;;  %809 = vperm.xlu1 %1247, %v755_v49  }
  0x50   : > { %1158 = vmatmul.msk.f32.gmra.mxu0 %vm455_vm0, %v349_v39  ;;  %814 = vperm.xlu2 %1248, %v756_v62  }
  0x51   : > { %1174 = vmatmul.msk.f32.gmra.mxu1 %vm455_vm0, %v349_v39 }
  0x56   : > { %819 = vperm.xlu0 %1246, %v757_v51   ;;  %824 = vperm.xlu1 %1247, %v758_v52  }
  0x58   : > { %1159 = vmatmul.msk.f32.gmra.mxu0 %vm455_vm0, %v350_v41  ;;  %829 = vperm.xlu2 %1248, %v759_v0  }
  0x59   : > { %1175 = vmatmul.msk.f32.gmra.mxu1 %vm455_vm0, %v350_v41 }
  0x5e   : > { %834 = vperm.xlu0 %1246, %v760_v55   ;;  %839 = vperm.xlu1 %1247, %v761_v56  }
  0x60   : > { %1160 = vmatmul.msk.f32.gmra.mxu0 %vm455_vm0, %v351_v44 }
  0x61   : > { %1176 = vmatmul.msk.f32.gmra.mxu1 %vm455_vm0, %v351_v44 }
  0x68   : > { %1161 = vmatmul.msk.f32.gmra.mxu0 %vm455_vm0, %v352_v47 }
  0x69   : > { %1177 = vmatmul.msk.f32.gmra.mxu1 %vm455_vm0, %v352_v47 }
  0x6a   : > { %v433_v29 = vpop.permute.xlu2 %432 }
  0x70   : > { %1162 = vmatmul.msk.f32.gmra.mxu0 %vm455_vm0, %v353_v50 }
  0x71   : > { %1178 = vmatmul.msk.f32.gmra.mxu1 %vm455_vm0, %v353_v50 }
  0x72   : > { %v428_v34 = vpop.permute.xlu2 %427 }
  0x78   : > { %1163 = vmatmul.msk.f32.gmra.mxu0 %vm455_vm0, %v354_v53 }
  0x79   : > { %1179 = vmatmul.msk.f32.gmra.mxu1 %vm455_vm0, %v354_v53 }
  0x7a   : > { %v1565_v46 = vpop.permute.xlu2 %412 }
  0x80   : > { %1164 = vmatmul.msk.f32.gmra.mxu0 %vm455_vm0, %v355_v57  ;;  %v453_v25 = vpop.permute.xlu0 %452  ;;  %v443_v28 = vpop.permute.xlu1 %442 }
  0x81   : > { %1180 = vmatmul.msk.f32.gmra.mxu1 %vm455_vm0, %v355_v57 }
  0x88   : > { %1165 = vmatmul.msk.f32.gmra.mxu0 %vm455_vm0, %v356_v59  ;;  %v448_v30 = vpop.permute.xlu0 %447  ;;  %v438_v33 = vpop.permute.xlu1 %437 }
  0x89   : > { %1181 = vmatmul.msk.f32.gmra.mxu1 %vm455_vm0, %v356_v59 }
  0x90   : > { %1166 = vmatmul.msk.f32.gmra.mxu0 %vm455_vm0, %v357_v61  ;;  %v423_v37 = vpop.permute.xlu0 %422  ;;  %v418_v39 = vpop.permute.xlu1 %417 }
  0x91   : > { %1182 = vmatmul.msk.f32.gmra.mxu1 %vm455_vm0, %v357_v61 }
  0x98   : > { %1167 = vmatmul.msk.f32.gmra.mxu0 %vm455_vm0, %v358_v63  ;;  %v1567_v52 = vpop.permute.xlu0 %407 }
  0x99   : > { %1183 = vmatmul.msk.f32.gmra.mxu1 %vm455_vm0, %v358_v63 }
  0x9d   : > { %v1527_v1 = vpop.f32.mrf.mxu0 }
  0x9e   : > { %v1529_v2 = vpop.f32.mrf.mxu1 }
  0xa5   : > { %v1531_v3 = vpop.f32.mrf.mxu0 }
  0xa6   : > { %v1533_v4 = vpop.f32.mrf.mxu1 }
  0xad   : > { %v1535_v5 = vpop.f32.mrf.mxu0 }
  0xae   : > { %v1537_v6 = vpop.f32.mrf.mxu1 }
  0xb5   : > { %v1539_v7 = vpop.f32.mrf.mxu0 }
  0xb6   : > { %v1541_v8 = vpop.f32.mrf.mxu1 }
  0xbd   : > { %v1543_v9 = vpop.f32.mrf.mxu0 }
  0xbe   : > { %v1545_v10 = vpop.f32.mrf.mxu1 }
  0xc5   : > { %v1547_v11 = vpop.f32.mrf.mxu0 }
  0xc6   : > { %v1549_v12 = vpop.f32.mrf.mxu1 }
  0xcd   : > { %v1551_v13 = vpop.f32.mrf.mxu0 }
  0xce   : > { %v1553_v14 = vpop.f32.mrf.mxu1 }
  0xd5   : > { %v1555_v15 = vpop.f32.mrf.mxu0 }
  0xd6   : > { %v1557_v16 = vpop.f32.mrf.mxu1 }
  0xdd   : > { %v1559_v17 = vpop.f32.mrf.mxu0 }
  0xde   : > { %v1561_v18 = vpop.f32.mrf.mxu1 }
  0xe5   : > { %v548_v19 = vpop.f32.mrf.mxu0 }
  0xe6   : > { %v1563_v20 = vpop.f32.mrf.mxu1 }
  0xed   : > { %v551_v21 = vpop.f32.mrf.mxu0 }
  0xee   : > { %v616_v22 = vpop.f32.mrf.mxu1  ;;  %v552_v61 = vadd.f32 %v551_v21, %v428_v34  ;;  %v403_v21 = vpop.permute.xlu1 %402 }
  0xef   : > { %v617_v0 = vadd.f32 %v616_v22, %v428_v34 }
  0xf0   : > { %vm654_vm11 = vcmp.ge.f32.partialorder %v552_v61, 0.0 }
  0xf1   : > { %v687_v34 = vmul.f32 0.1, %v617_v0  ;;  %vm655_vm12 = vcmp.ge.f32.partialorder %v617_v0, 0.0 }
  0xf5   : > { %v554_v23 = vpop.f32.mrf.mxu0 }
  0xf6   : > { %v619_v24 = vpop.f32.mrf.mxu1  ;;  %v555_v53 = vadd.f32 %v554_v23, %v433_v29 }
  0xf7   : > { %v620_v59 = vadd.f32 %v619_v24, %v433_v29 }
  0xf8   : > { %vm656_vm9 = vcmp.ge.f32.partialorder %v555_v53, 0.0 }
  0xf9   : > { %v689_v29 = vmul.f32 0.1, %v620_v59  ;;  %vm657_vm10 = vcmp.ge.f32.partialorder %v620_v59, 0.0 }
  0xfd   : > { %v557_v26 = vpop.f32.mrf.mxu0 }
  0xfe   : > { %v622_v27 = vpop.f32.mrf.mxu1  ;;  %v558_v47 = vadd.f32 %v557_v26, %v438_v33  ;;  %v549_v26 = vadd.f32 %v548_v19, %v423_v37 }
  0xff   : > { %v623_v54 = vadd.f32 %v622_v27, %v438_v33  ;;  %v688_v27 = vmul.f32 0.1, %v555_v53  ;;  %v611_v33 = vadd.f32 %v1561_v18, %v418_v39  ;;  %v721_v18 = vsel %vm657_vm10, %v620_v59, %v689_v29 }
 0x100   : > { %v690_v63 = vmul.f32 0.1, %v558_v47  ;;  %vm658_vm7 = vcmp.ge.f32.partialorder %v558_v47, 0.0  ;;  %vm652_vm13 = vcmp.ge.f32.partialorder %v549_v26, 0.0 }
 0x101   : > { %vm659_vm8 = vcmp.ge.f32.partialorder %v623_v54, 0.0  ;;  %vm651_vm0 = vcmp.ge.f32.partialorder %v611_v33, 0.0 }
 0x102   : > { %v722_v19 = vsel %vm658_vm7, %v558_v47, %v690_v63 }
 0x105   : > { %v560_v31 = vpop.f32.mrf.mxu0 }
 0x106   : > { %v625_v32 = vpop.f32.mrf.mxu1  ;;  %v561_v43 = vadd.f32 %v560_v31, %v443_v28  ;;  %v686_v31 = vmul.f32 0.1, %v552_v61 }
 0x107   : > { %v626_v48 = vadd.f32 %v625_v32, %v443_v28  ;;  %v614_v28 = vadd.f32 %v1563_v20, %v423_v37  ;;  %v398_v32 = vpop.permute.xlu2 %397  ;;  %v393_v37 = vpop.permute.xlu0 %392 }
 0x108   : > { %v692_v58 = vmul.f32 0.1, %v561_v43  ;;  %vm660_vm5 = vcmp.ge.f32.partialorder %v561_v43, 0.0 }
 0x109   : > { %v693_v60 = vmul.f32 0.1, %v626_v48  ;;  %vm661_vm6 = vcmp.ge.f32.partialorder %v626_v48, 0.0  ;;  %vm653_vm14 = vcmp.ge.f32.partialorder %v614_v28, 0.0 }
 0x10a   : > { %v724_v24 = vsel %vm660_vm5, %v561_v43, %v692_v58  ;;  %v683_v43 = vmul.f32 0.1, %v611_v33 }
 0x10b   : > { %v725_v22 = vsel %vm661_vm6, %v626_v48, %v693_v60  ;;  %v534_v48 = vadd.f32 %v1543_v9, %v398_v32 }
 0x10d   : > { %v563_v35 = vpop.f32.mrf.mxu0  ;;  %v674_v59 = vmul.f32 0.1, %v534_v48  ;;  %vm642_vm7 = vcmp.ge.f32.partialorder %v534_v48, 0.0 }
 0x10e   : > { %v628_v36 = vpop.f32.mrf.mxu1  ;;  %v564_v38 = vadd.f32 %v563_v35, %v448_v30  ;;  %v543_v35 = vadd.f32 %v1555_v15, %v1565_v46  ;;  %v718_v15 = vsel %vm654_vm11, %v552_v61, %v686_v31 }
 0x10f   : > { %v629_v40 = vadd.f32 %v628_v36, %v448_v30  ;;  %v546_v30 = vadd.f32 %v1559_v17, %v418_v39  ;;  %v720_v17 = vsel %vm656_vm9, %v555_v53, %v688_v27  ;;  %v684_v36 = vmul.f32 0.1, %v549_v26  ;;  %v378_v60 = vpop.permute.xlu0 %377 }
 0x110   : > { %v694_v49 = vmul.f32 0.1, %v564_v38  ;;  %vm662_vm3 = vcmp.ge.f32.partialorder %v564_v38, 0.0  ;;  %v685_v39 = vmul.f32 0.1, %v614_v28  ;;  %v531_v53 = vadd.f32 %v1539_v7, %v393_v37 }
 0x111   : > { %v695_v55 = vmul.f32 0.1, %v629_v40  ;;  %vm663_vm4 = vcmp.ge.f32.partialorder %v629_v40, 0.0  ;;  %vm650_vm15 = vcmp.ge.f32.partialorder %v546_v30, 0.0  ;;  %v587_v27 = vadd.f32 %v1529_v2, %v378_v60 }
 0x112   : > { %v726_v62 = vsel %vm662_vm3, %v564_v38, %v694_v49  ;;  %v608_v38 = vadd.f32 %v1557_v16, %v1565_v46  ;;  %v719_v16 = vsel %vm655_vm12, %v617_v0, %v687_v34  ;;  %v602_v46 = vadd.f32 %v1549_v12, %v403_v21  ;;  %v730_v34 = vld [vmem:[%s1765_s4] sm:$0xff] }
 0x113   : > { %v727_v23 = vsel %vm663_vm4, %v629_v40, %v695_v55  ;;  %v540_v40 = vadd.f32 %v1551_v13, %v1567_v52  ;;  %v716_v13 = vsel %vm652_vm13, %v549_v26, %v684_v36  ;;  %v715_v12 = vsel %vm651_vm0, %v611_v33, %v683_v43  ;;  %v383_v55 = vpop.permute.xlu2 %382  ;;  %v732_v36 = vld [vmem:[%s1765_s4 + $0x10] sm:$0xff]  ;;  %v742_v43 = vld [vmem:[%s1765_s4 + $0x60] sm:$0xff] }
 0x114   : > { %v681_v47 = vmul.f32 0.1, %v608_v38  ;;  %vm645_vm6 = vcmp.ge.f32.partialorder %v602_v46, 0.0  ;;  %v525_v63 = vadd.f32 %v1531_v3, %v383_v55  ;;  %v672_v0 = vmul.f32 0.1, %v531_v53 }
 0x115   : > { %v566_v41 = vpop.f32.mrf.mxu0  ;;  %v678_v49 = vmul.f32 0.1, %v540_v40  ;;  %vm646_vm3 = vcmp.ge.f32.partialorder %v540_v40, 0.0  ;;  %vm640_vm9 = vcmp.ge.f32.partialorder %v531_v53, 0.0  ;;  %v522_v26 = vadd.f32 %v1527_v1, %v378_v60 }
 0x116   : > { %v631_v42 = vpop.f32.mrf.mxu1  ;;  %v567_v44 = vadd.f32 %v566_v41, %v453_v25  ;;  %v682_v41 = vmul.f32 0.1, %v546_v30  ;;  %v706_v3 = vsel %vm642_vm7, %v534_v48, %v674_v59  ;;  %v668_v1 = vmul.f32 0.1, %v525_v63 }
 0x117   : > { %v632_v45 = vadd.f32 %v631_v42, %v453_v25  ;;  %v691_v25 = vmul.f32 0.1, %v623_v54  ;;  %v605_v42 = vadd.f32 %v1553_v14, %v1567_v52  ;;  %v717_v14 = vsel %vm653_vm14, %v614_v28, %v685_v39  ;;  %v736_v39 = vld [vmem:[%s1765_s4 + $0x30] sm:$0xff] }
 0x118   : > { %vm664_vm1 = vcmp.ge.f32.partialorder %v567_v44, 0.0  ;;  %v696_v50 = vmul.f32 0.1, %v567_v44  ;;  %v710_v7 = vsel %vm646_vm3, %v540_v40, %v678_v49  ;;  %v704_v28 = vsel %vm640_vm9, %v531_v53, %v672_v0  ;;  %v737_v40 = vld [vmem:[%s1765_s4 + $0x38] sm:$0xff]  ;;  %v973_v0 = vld [vmem:[%s1688_s15 + $0x8] sm:$0xff] }
 0x119   : > { %vm665_vm2 = vcmp.ge.f32.partialorder %v632_v45, 0.0  ;;  %v697_v51 = vmul.f32 0.1, %v632_v45  ;;  %v723_v20 = vsel %vm659_vm8, %v623_v54, %v691_v25  ;;  %v679_v52 = vmul.f32 0.1, %v605_v42 }
 0x11a   : > { %v728_v56 = vsel %vm664_vm1, %v567_v44, %v696_v50  ;;  %v537_v44 = vadd.f32 %v1547_v11, %v403_v21  ;;  %vm648_vm1 = vcmp.ge.f32.partialorder %v543_v35, 0.0  ;;  %v714_v11 = vsel %vm650_vm15, %v546_v30, %v682_v41  ;;  %v388_v50 = vpop.permute.xlu1 %387  ;;  %v739_v41 = vld [vmem:[%s1765_s4 + $0x48] sm:$0xff] }
 0x11b   : > { %v729_v57 = vsel %vm665_vm2, %v632_v45, %v697_v51  ;;  %842 = vmatpush.msrb.mxu0 %v728_v56  ;;  %1189 = vmatpush.msra.mxu2 %v728_v56  ;;  %v680_v45 = vmul.f32 0.1, %v543_v35  ;;  %vm649_vm2 = vcmp.ge.f32.partialorder %v608_v38, 0.0  ;;  %v599_v51 = vadd.f32 %v1545_v10, %v398_v32 }
 0x11c   : > { %907 = vmatpush.msrb.mxu1 %v729_v57  ;;  %1205 = vmatpush.msra.mxu3 %v729_v57  ;;  %vm647_vm4 = vcmp.ge.f32.partialorder %v605_v42, 0.0  ;;  %v676_v54 = vmul.f32 0.1, %v537_v44  ;;  %v596_v56 = vadd.f32 %v1541_v8, %v393_v37  ;;  %v713_v10 = vsel %vm649_vm2, %v608_v38, %v681_v47  ;;  %v733_v37 = vld [vmem:[%s1765_s4 + $0x18] sm:$0xff]  ;;  %v734_v38 = vld [vmem:[%s1765_s4 + $0x20] sm:$0xff] }
 0x11d   : > { %843 = vmatpush.msrb.mxu0 %v726_v62  ;;  %1190 = vmatpush.msra.mxu2 %v726_v62  ;;  %v712_v9 = vsel %vm648_vm1, %v543_v35, %v680_v45  ;;  %vm644_vm5 = vcmp.ge.f32.partialorder %v537_v44, 0.0  ;;  %v677_v57 = vmul.f32 0.1, %v602_v46  ;;  %v528_v58 = vadd.f32 %v1535_v5, %v388_v50  ;;  %v731_v35 = vld [vmem:[%s1765_s4 + $0x8] sm:$0xff]  ;;  %v745_v45 = vld [vmem:[%s1765_s4 + $0x78] sm:$0xff] }
 0x11e   : > { %908 = vmatpush.msrb.mxu1 %v727_v23  ;;  %1206 = vmatpush.msra.mxu3 %v727_v23  ;;  %v593_v61 = vadd.f32 %v1537_v6, %v388_v50  ;;  %v711_v8 = vsel %vm647_vm4, %v605_v42, %v679_v52  ;;  %v675_v62 = vmul.f32 0.1, %v599_v51  ;;  %v708_v5 = vsel %vm644_vm5, %v537_v44, %v676_v54  ;;  %v740_v42 = vld [vmem:[%s1765_s4 + $0x50] sm:$0xff]  ;;  %v743_v44 = vld [vmem:[%s1765_s4 + $0x68] sm:$0xff] }
 0x11f   : > { %844 = vmatpush.msrb.mxu0 %v724_v24  ;;  %1191 = vmatpush.msra.mxu2 %v724_v24  ;;  %vm643_vm8 = vcmp.ge.f32.partialorder %v599_v51, 0.0  ;;  %v590_v23 = vadd.f32 %v1533_v4, %v383_v55  ;;  %v709_v6 = vsel %vm645_vm6, %v602_v46, %v677_v57  ;;  %v673_v25 = vmul.f32 0.1, %v596_v56 }
 0x120   : > { %909 = vmatpush.msrb.mxu1 %v725_v22  ;;  %1207 = vmatpush.msra.mxu3 %v725_v22  ;;  %vm641_vm10 = vcmp.ge.f32.partialorder %v596_v56, 0.0  ;;  %v670_v24 = vmul.f32 0.1, %v528_v58  ;;  %v707_v4 = vsel %vm643_vm8, %v599_v51, %v675_v62  ;;  %vm638_vm11 = vcmp.ge.f32.partialorder %v528_v58, 0.0 }
 0x121   : > { %845 = vmatpush.msrb.mxu0 %v722_v19  ;;  %1192 = vmatpush.msra.mxu2 %v722_v19  ;;  %v671_v21 = vmul.f32 0.1, %v593_v61  ;;  %vm639_vm12 = vcmp.ge.f32.partialorder %v593_v61, 0.0  ;;  %v705_v22 = vsel %vm641_vm10, %v596_v56, %v673_v25  ;;  %vm636_vm13 = vcmp.ge.f32.partialorder %v525_v63, 0.0  ;;  %v770_v56 = vpop.permute.xlu2 %769 }
 0x122   : > { %910 = vmatpush.msrb.mxu1 %v723_v20  ;;  %1208 = vmatpush.msra.mxu3 %v723_v20  ;;  %v669_v29 = vmul.f32 0.1, %v590_v23  ;;  %v702_v2 = vsel %vm638_vm11, %v528_v58, %v670_v24  ;;  %vm637_vm14 = vcmp.ge.f32.partialorder %v590_v23, 0.0  ;;  %v666_v30 = vmul.f32 0.1, %v522_v26  ;;  %v765_v53 = vpop.permute.xlu1 %764 }
 0x123   : > { %846 = vmatpush.msrb.mxu0 %v720_v17  ;;  %1193 = vmatpush.msra.mxu2 %v720_v17  ;;  %v703_v19 = vsel %vm639_vm12, %v593_v61, %v671_v21  ;;  %vm634_vm15 = vcmp.ge.f32.partialorder %v522_v26, 0.0  ;;  %v667_v31 = vmul.f32 0.1, %v587_v27  ;;  %v700_v32 = vsel %vm636_vm13, %v525_v63, %v668_v1  ;;  %v972_v63 = vld [vmem:[%s1688_s15] sm:$0xff] }
 0x124   : > { %911 = vmatpush.msrb.mxu1 %v721_v18  ;;  %1209 = vmatpush.msra.mxu3 %v721_v18  ;;  %vm635_vm0 = vcmp.ge.f32.partialorder %v587_v27, 0.0  ;;  %v701_v33 = vsel %vm637_vm14, %v590_v23, %v669_v29  ;;  %v698_v20 = vsel %vm634_vm15, %v522_v26, %v666_v30  ;;  %v735_v18 = vld [vmem:[%s1765_s4 + $0x28] sm:$0xff] }
 0x125   : > { %847 = vmatpush.msrb.mxu0 %v718_v15  ;;  %1194 = vmatpush.msra.mxu2 %v718_v15  ;;  %v699_v17 = vsel %vm635_vm0, %v587_v27, %v667_v31  ;;  %v738_v15 = vld [vmem:[%s1765_s4 + $0x40] sm:$0xff] }
 0x126   : > { %912 = vmatpush.msrb.mxu1 %v719_v16  ;;  %1210 = vmatpush.msra.mxu3 %v719_v16  ;;  %v741_v16 = vld [vmem:[%s1765_s4 + $0x58] sm:$0xff] }
 0x127   : > { %848 = vmatpush.msrb.mxu0 %v716_v13  ;;  %1195 = vmatpush.msra.mxu2 %v716_v13  ;;  %v744_v13 = vld [vmem:[%s1765_s4 + $0x70] sm:$0xff] }
 0x128   : > { %913 = vmatpush.msrb.mxu1 %v717_v14  ;;  %1211 = vmatpush.msra.mxu3 %v717_v14 }
 0x129   : > { %849 = vmatpush.msrb.mxu0 %v714_v11  ;;  %1196 = vmatpush.msra.mxu2 %v714_v11  ;;  %v1690_v61 = vpop.permute.xlu2 %784 }
 0x12a   : > { %914 = vmatpush.msrb.mxu1 %v715_v12  ;;  %1212 = vmatpush.msra.mxu3 %v715_v12 }
 0x12b   : > { %850 = vmatpush.msrb.mxu0 %v712_v9  ;;  %1197 = vmatpush.msra.mxu2 %v712_v9  ;;  %v775_v9 = vpop.permute.xlu0 %774 }
 0x12c   : > { %915 = vmatpush.msrb.mxu1 %v713_v10  ;;  %1213 = vmatpush.msra.mxu3 %v713_v10  ;;  %v780_v10 = vpop.permute.xlu1 %779 }
 0x12d   : > { %851 = vmatpush.msrb.mxu0 %v710_v7  ;;  %1198 = vmatpush.msra.mxu2 %v710_v7 }
 0x12e   : > { %916 = vmatpush.msrb.mxu1 %v711_v8  ;;  %1214 = vmatpush.msra.mxu3 %v711_v8 }
 0x12f   : > { %852 = vmatpush.msrb.mxu0 %v708_v5  ;;  %1199 = vmatpush.msra.mxu2 %v708_v5 }
 0x130   : > { %917 = vmatpush.msrb.mxu1 %v709_v6  ;;  %1215 = vmatpush.msra.mxu3 %v709_v6 }
 0x131   : > { %853 = vmatpush.msrb.mxu0 %v706_v3  ;;  %1200 = vmatpush.msra.mxu2 %v706_v3  ;;  %v1703_v1 = vpop.permute.xlu2 %799 }
 0x132   : > { %918 = vmatpush.msrb.mxu1 %v707_v4  ;;  %1216 = vmatpush.msra.mxu3 %v707_v4 }
 0x133   : > { %854 = vmatpush.msrb.mxu0 %v704_v28  ;;  %1201 = vmatpush.msra.mxu2 %v704_v28  ;;  %v1678_v57 = vpop.permute.xlu0 %789 }
 0x134   : > { %919 = vmatpush.msrb.mxu1 %v705_v22  ;;  %1217 = vmatpush.msra.mxu3 %v705_v22  ;;  %v1692_v62 = vpop.permute.xlu1 %794  ;;  %v974_v22 = vld [vmem:[%s1688_s15 + $0x10] sm:$0xff] }
 0x135   : > { %855 = vmatpush.msrb.mxu0 %v702_v2  ;;  %1202 = vmatpush.msra.mxu2 %v702_v2  ;;  %v975_v2 = vld [vmem:[%s1688_s15 + $0x18] sm:$0xff] }
 0x136   : > { %920 = vmatpush.msrb.mxu1 %v703_v19  ;;  %1218 = vmatpush.msra.mxu3 %v703_v19 }
 0x137   : > { %856 = vmatpush.msrb.mxu0 %v700_v32  ;;  %1203 = vmatpush.msra.mxu2 %v700_v32 }
 0x138   : > { %921 = vmatpush.msrb.mxu1 %v701_v33  ;;  %1219 = vmatpush.msra.mxu3 %v701_v33 }
 0x139   : > { %857 = vmatpush.msrb.mxu0 %v698_v20  ;;  %1204 = vmatpush.msra.mxu2 %v698_v20 }
 0x13a   : > { %922 = vmatpush.msrb.mxu1 %v699_v17  ;;  %1220 = vmatpush.msra.mxu3 %v699_v17 }
 0x13b   : > { %858 = vmatmul.f32.vlgmr.msrb.gmra.mxu0 %v730_v34  ;;  %861 = vmatmul.f32.vlgmr.msra.gmra.mxu2 %v731_v35  ;;  %v805_v23 = vpop.permute.xlu0 %804 }
 0x13c   : > { %923 = vmatmul.f32.vlgmr.msrb.gmra.mxu1 %v730_v34  ;;  %926 = vmatmul.f32.vlgmr.msra.gmra.mxu3 %v731_v35  ;;  %v810_v30 = vpop.permute.xlu1 %809 }
 0x143   : > { %864 = vmatmul.f32.gmra.mxu2 %v732_v36 }
 0x144   : > { %929 = vmatmul.f32.gmra.mxu3 %v732_v36 }
 0x14b   : > { %867 = vmatmul.f32.gmra.mxu2 %v733_v37 }
 0x14c   : > { %932 = vmatmul.f32.gmra.mxu3 %v733_v37  ;;  %v976_v37 = vld [vmem:[%s1688_s15 + $0x20] sm:$0xff] }
 0x153   : > { %870 = vmatmul.f32.gmra.mxu2 %v734_v38 }
 0x154   : > { %935 = vmatmul.f32.gmra.mxu3 %v734_v38 }
 0x15b   : > { %873 = vmatmul.f32.gmra.mxu2 %v735_v18 }
 0x15c   : > { %938 = vmatmul.f32.gmra.mxu3 %v735_v18  ;;  %v977_v18 = vld [vmem:[%s1688_s15 + $0x28] sm:$0xff] }
 0x163   : > { %876 = vmatmul.f32.gmra.mxu2 %v736_v39 }
 0x164   : > { %941 = vmatmul.f32.gmra.mxu3 %v736_v39  ;;  %v815_v39 = vpop.permute.xlu2 %814 }
 0x16b   : > { %879 = vmatmul.f32.gmra.mxu2 %v737_v40 }
 0x16c   : > { %944 = vmatmul.f32.gmra.mxu3 %v737_v40 }
 0x173   : > { %882 = vmatmul.f32.gmra.mxu2 %v738_v15 }
 0x174   : > { %947 = vmatmul.f32.gmra.mxu3 %v738_v15 }
 0x17b   : > { %885 = vmatmul.f32.gmra.mxu2 %v739_v41 }
 0x17c   : > { %950 = vmatmul.f32.gmra.mxu3 %v739_v41 }
 0x183   : > { %888 = vmatmul.f32.gmra.mxu2 %v740_v42 }
 0x184   : > { %953 = vmatmul.f32.gmra.mxu3 %v740_v42 }
 0x18b   : > { %891 = vmatmul.f32.gmra.mxu2 %v741_v16 }
 0x18c   : > { %956 = vmatmul.f32.gmra.mxu3 %v741_v16 }
 0x193   : > { %894 = vmatmul.f32.gmra.mxu2 %v742_v43 }
 0x194   : > { %959 = vmatmul.f32.gmra.mxu3 %v742_v43 }
 0x19b   : > { %897 = vmatmul.f32.gmra.mxu2 %v743_v44 }
 0x19c   : > { %962 = vmatmul.f32.gmra.mxu3 %v743_v44 }
 0x1a3   : > { %900 = vmatmul.f32.gmra.mxu2 %v744_v13 }
 0x1a4   : > { %965 = vmatmul.f32.gmra.mxu3 %v744_v13 }
 0x1ab   : > { %903 = vmatmul.f32.gmra.mxu2 %v745_v45 }
 0x1ac   : > { %968 = vmatmul.f32.gmra.mxu3 %v745_v45 }
 0x1b8   : > { %v859_v59 = vpop.f32.mrf.mxu0 }
 0x1b9   : > { %v924_v60 = vpop.f32.mrf.mxu1  ;;  %v860_v8 = vadd.f32 %v859_v59, %v765_v53 }
 0x1ba   : > { %v925_v5 = vadd.f32 %v924_v60, %v765_v53 }
 0x1bb   : > { %v988_v25 = vmul.f32 %v972_v63, %v860_v8 }
 0x1bc   : > { %v989_v24 = vmul.f32 %v973_v0, %v925_v5  ;;  %v981_v0 = vld [vmem:[%s1688_s15 + $0x48] sm:$0xff] }
 0x1be   : > { %v862_v46 = vpop.f32.mrf.mxu2 }
 0x1bf   : > { %v927_v14 = vpop.f32.mrf.mxu3  ;;  %v863_v28 = vadd.f32 %v862_v46, %v770_v56  ;;  %v978_v46 = vld [vmem:[%s1688_s15 + $0x30] sm:$0xff] }
 0x1c0   : > { %v928_v29 = vadd.f32 %v927_v14, %v770_v56 }
 0x1c1   : > { %v990_v31 = vmul.f32 %v974_v22, %v863_v28  ;;  %v983_v28 = vld [vmem:[%s1688_s15 + $0x58] sm:$0xff]  ;;  %v830_v22 = vpop.permute.xlu2 %829 }
 0x1c2   : > { %v991_v20 = vmul.f32 %v975_v2, %v928_v29 }
 0x1c6   : > { %v865_v47 = vpop.f32.mrf.mxu2 }
 0x1c7   : > { %v930_v48 = vpop.f32.mrf.mxu3  ;;  %v866_v36 = vadd.f32 %v865_v47, %v775_v9  ;;  %v979_v47 = vld [vmem:[%s1688_s15 + $0x38] sm:$0xff] }
 0x1c8   : > { %v931_v38 = vadd.f32 %v930_v48, %v775_v9  ;;  %v820_v48 = vpop.permute.xlu0 %819 }
 0x1c9   : > { %v992_v15 = vmul.f32 %v976_v37, %v866_v36 }
 0x1ca   : > { %v993_v16 = vmul.f32 %v977_v18, %v931_v38 }
 0x1ce   : > { %v1662_v11 = vpop.f32.mrf.mxu2 }
 0x1cf   : > { %v1664_v49 = vpop.f32.mrf.mxu3  ;;  %v869_v45 = vadd.f32 %v1662_v11, %v780_v10 }
 0x1d0   : > { %v934_v14 = vadd.f32 %v1664_v49, %v780_v10  ;;  %v980_v49 = vld [vmem:[%s1688_s15 + $0x40] sm:$0xff] }
 0x1d1   : > { %v994_v9 = vmul.f32 %v978_v46, %v869_v45 }
 0x1d2   : > { %v995_v60 = vmul.f32 %v979_v47, %v934_v14 }
 0x1d6   : > { %v1666_v50 = vpop.f32.mrf.mxu2 }
 0x1d7   : > { %v1668_v51 = vpop.f32.mrf.mxu3  ;;  %v872_v11 = vadd.f32 %v1666_v50, %v1690_v61 }
 0x1d8   : > { %v937_v10 = vadd.f32 %v1668_v51, %v1690_v61  ;;  %v982_v51 = vld [vmem:[%s1688_s15 + $0x50] sm:$0xff] }
 0x1de   : > { %v1670_v12 = vpop.f32.mrf.mxu2 }
 0x1df   : > { %v1672_v52 = vpop.f32.mrf.mxu3 }
 0x1e0   : > { %v940_v61 = vadd.f32 %v1672_v52, %v1678_v57  ;;  %v984_v52 = vld [vmem:[%s1688_s15 + $0x60] sm:$0xff] }
 0x1e6   : > { %v1674_v54 = vpop.f32.mrf.mxu2 }
 0x1e7   : > { %v1676_v55 = vpop.f32.mrf.mxu3 }
 0x1ee   : > { %v1680_v58 = vpop.f32.mrf.mxu2 }
 0x1ef   : > { %v1682_v7 = vpop.f32.mrf.mxu3 }
 0x1f6   : > { %v883_v6 = vpop.f32.mrf.mxu2 }
 0x1f7   : > { %v884_v26 = vadd.f32 %v883_v6, %v805_v23  ;;  %v948_v3 = vpop.f32.mrf.mxu3 }
 0x1f8   : > { %v949_v27 = vadd.f32 %v948_v3, %v805_v23  ;;  %v825_v23 = vpop.permute.xlu1 %824 }
 0x1f9   : > { %v1004_v4 = vadd.f32 %v988_v25, %v884_v26  ;;  %v996_v25 = vmul.f32 %v980_v49, %v872_v11 }
 0x1fa   : > { %v1005_v21 = vadd.f32 %v989_v24, %v949_v27  ;;  %v997_v24 = vmul.f32 %v981_v0, %v937_v10 }
 0x1fb   : > { %1020 = vst [vmem:[%s1700_s18] sm:$0xff] %v1004_v4 }
 0x1fc   : > { %1021 = vst [vmem:[%s1700_s18 + $0x8] sm:$0xff] %v1005_v21  ;;  %v875_v21 = vadd.f32 %v1670_v12, %v1678_v57  ;;  %v943_v57 = vadd.f32 %v1676_v55, %v1692_v62  ;;  %v986_v55 = vld [vmem:[%s1688_s15 + $0x70] sm:$0xff] }
 0x1fe   : > { %v886_v19 = vpop.f32.mrf.mxu2  ;;  %v998_v2 = vmul.f32 %v982_v51, %v875_v21 }
 0x1ff   : > { %v887_v32 = vadd.f32 %v886_v19, %v810_v30  ;;  %v951_v33 = vpop.f32.mrf.mxu3 }
 0x200   : > { %v952_v34 = vadd.f32 %v951_v33, %v810_v30 }
 0x201   : > { %v1006_v35 = vadd.f32 %v990_v31, %v887_v32  ;;  %v999_v31 = vmul.f32 %v983_v28, %v940_v61 }
 0x202   : > { %v1007_v17 = vadd.f32 %v991_v20, %v952_v34  ;;  %v878_v20 = vadd.f32 %v1674_v54, %v1692_v62  ;;  %v985_v34 = vld [vmem:[%s1688_s15 + $0x68] sm:$0xff]  ;;  %v946_v62 = vadd.f32 %v1682_v7, %v1703_v1 }
 0x203   : > { %1022 = vst [vmem:[%s1700_s18 + $0x10] sm:$0xff] %v1006_v35  ;;  %v835_v35 = vpop.permute.xlu0 %834  ;;  %v1001_v18 = vmul.f32 %v985_v34, %v943_v57 }
 0x204   : > { %1023 = vst [vmem:[%s1700_s18 + $0x18] sm:$0xff] %v1007_v17  ;;  %v1000_v36 = vmul.f32 %v984_v52, %v878_v20 }
 0x206   : > { %v889_v40 = vpop.f32.mrf.mxu2 }
 0x207   : > { %v890_v41 = vadd.f32 %v889_v40, %v815_v39  ;;  %v954_v42 = vpop.f32.mrf.mxu3 }
 0x208   : > { %v955_v43 = vadd.f32 %v954_v42, %v815_v39  ;;  %v840_v42 = vpop.permute.xlu1 %839 }
 0x209   : > { %v1008_v44 = vadd.f32 %v992_v15, %v890_v41  ;;  %v881_v15 = vadd.f32 %v1680_v58, %v1703_v1  ;;  %v987_v41 = vld [vmem:[%s1688_s15 + $0x78] sm:$0xff] }
 0x20a   : > { %v1009_v13 = vadd.f32 %v993_v16, %v955_v43  ;;  %v1003_v45 = vmul.f32 %v987_v41, %v946_v62 }
 0x20b   : > { %1024 = vst [vmem:[%s1700_s18 + $0x20] sm:$0xff] %v1008_v44  ;;  %v1002_v43 = vmul.f32 %v986_v55, %v881_v15 }
 0x20c   : > { %1025 = vst [vmem:[%s1700_s18 + $0x28] sm:$0xff] %v1009_v13 }
 0x20e   : > { %v892_v53 = vpop.f32.mrf.mxu2 }
 0x20f   : > { %v893_v56 = vadd.f32 %v892_v53, %v820_v48  ;;  %v957_v59 = vpop.f32.mrf.mxu3 }
 0x210   : > { %v958_v8 = vadd.f32 %v957_v59, %v820_v48 }
 0x211   : > { %v1010_v63 = vadd.f32 %v994_v9, %v893_v56 }
 0x212   : > { %v1011_v5 = vadd.f32 %v995_v60, %v958_v8 }
 0x213   : > { %1026 = vst [vmem:[%s1700_s18 + $0x30] sm:$0xff] %v1010_v63 }
 0x214   : > { %1027 = vst [vmem:[%s1700_s18 + $0x38] sm:$0xff] %v1011_v5 }
 0x216   : > { %v895_v6 = vpop.f32.mrf.mxu2 }
 0x217   : > { %v896_v26 = vadd.f32 %v895_v6, %v825_v23  ;;  %v960_v3 = vpop.f32.mrf.mxu3 }
 0x218   : > { %v961_v27 = vadd.f32 %v960_v3, %v825_v23 }
 0x219   : > { %v1012_v4 = vadd.f32 %v996_v25, %v896_v26 }
 0x21a   : > { %v1013_v50 = vadd.f32 %v997_v24, %v961_v27 }
 0x21b   : > { %1028 = vst [vmem:[%s1700_s18 + $0x40] sm:$0xff] %v1012_v4 }
 0x21c   : > { %1029 = vst [vmem:[%s1700_s18 + $0x48] sm:$0xff] %v1013_v50 }
 0x21e   : > { %v898_v29 = vpop.f32.mrf.mxu2 }
 0x21f   : > { %v899_v30 = vadd.f32 %v898_v29, %v830_v22  ;;  %v963_v19 = vpop.f32.mrf.mxu3 }
 0x220   : > { %v964_v32 = vadd.f32 %v963_v19, %v830_v22 }
 0x221   : > { %v1014_v33 = vadd.f32 %v998_v2, %v899_v30 }
 0x222   : > { %v1015_v12 = vadd.f32 %v999_v31, %v964_v32 }
 0x223   : > { %1030 = vst [vmem:[%s1700_s18 + $0x50] sm:$0xff] %v1014_v33 }
 0x224   : > { %1031 = vst [vmem:[%s1700_s18 + $0x58] sm:$0xff] %v1015_v12 }
 0x226   : > { %v901_v17 = vpop.f32.mrf.mxu2 }
 0x227   : > { %v902_v37 = vadd.f32 %v901_v17, %v835_v35  ;;  %v966_v38 = vpop.f32.mrf.mxu3 }
 0x228   : > { %v967_v39 = vadd.f32 %v966_v38, %v835_v35 }
 0x229   : > { %v1016_v40 = vadd.f32 %v1000_v36, %v902_v37 }
 0x22a   : > { %v1017_v54 = vadd.f32 %v1001_v18, %v967_v39 }
 0x22b   : > { %1032 = vst [vmem:[%s1700_s18 + $0x60] sm:$0xff] %v1016_v40 }
 0x22c   : > { %1033 = vst [vmem:[%s1700_s18 + $0x68] sm:$0xff] %v1017_v54 }
 0x22e   : > { %v904_v16 = vpop.f32.mrf.mxu2 }
 0x22f   : > { %v905_v44 = vadd.f32 %v904_v16, %v840_v42  ;;  %v969_v13 = vpop.f32.mrf.mxu3 }
 0x230   : > { %v970_v46 = vadd.f32 %v969_v13, %v840_v42 }
 0x231   : > { %v1018_v14 = vadd.f32 %v1002_v43, %v905_v44 }
 0x232   : > { %v1019_v47 = vadd.f32 %v1003_v45, %v970_v46 }
 0x233   : > { %1034 = vst [vmem:[%s1700_s18 + $0x70] sm:$0xff] %v1018_v14 }
 0x234   : > { %1035 = vst [vmem:[%s1700_s18 + $0x78] sm:$0xff] %v1019_v47 }
 0x235 PF: > { %s16_s23 = sadd.s32 1, %s1271_s23   ;;  %s1768_s21 = smov %s1267_s22 }
 0x236   : > { %p13_p5 = scmp.ge.s32.totalorder %s16_s23, 4   ;;  %s1769_s22 = smov %s1771_s24 }
 0x238   :  { %15 = sbr.rel (!%p13_p5) target bundleno = 2 (0x2), region = 77 }

</bundles_post_ra>
